<compile_context>
chip_gen: v7x
topology: tpu7x:2x2x1
jax: 0.10.0
libtpu: 0.0.40
codegen_flags: <defaults>
</compile_context>

<pallas_src>
import jax
import jax.numpy as jnp
import numpy as np
from jax import lax
from jax.experimental import pallas as pl
from jax.experimental.pallas import tpu as pltpu


def _indrnn_kernel(cols_ref, hx_ref, w_ref, p_ref, out_ref):
    """One spatial-tile grid step.

    cols_ref: (K*K*Cin, T)  im2col patches, folded batch*spatial on lanes
    hx_ref  : (Ch, T)       hidden state, same folded lane order
    w_ref   : (Ch, K*K*Cin) conv weight (one row per output channel)
    p_ref   : (Ch, 2)       column 0 = conv bias, column 1 = recurrent weight hh
    out_ref : (Ch, T)       next hidden state
    """
    # Single MXU matmul, f32 accumulate (operands may be f32 or bf16).
    conv = jnp.dot(w_ref[...], cols_ref[...], preferred_element_type=jnp.float32)
    p = p_ref[...].astype(jnp.float32)
    bias = p[:, 0:1]
    hh = p[:, 1:2]
    # f32 VPU epilogue: bias + hh * hx, ReLU, lane-dense store.
    pre = conv + bias + hh * hx_ref[...].astype(jnp.float32)
    out_ref[...] = jnp.maximum(pre, 0.0).astype(out_ref.dtype)


def _pick_tile(length, cap):
    """Largest tile <= cap that divides `length` and is a multiple of 128
    (or the full extent, which is always a legal BlockSpec block dim)."""
    if length <= cap:
        return length
    t = (cap // 128) * 128
    while t >= 128:
        if length % t == 0:
            return t
        t -= 128
    return length


def indrnn_cell_forward(x, hx, w_ih, b_ih, hh, *, kernel_size, dilation=1,
                        matmul_dtype=jnp.bfloat16, spatial_tile_cap=16384):
    """x: (B, Cin, H, W), hx: (B, Ch, H, W)  ->  (B, Ch, H, W), all NCHW."""
    B, Cin, H, W = x.shape
    Ch = hx.shape[1]
    K, D = kernel_size, dilation
    if (D * (K - 1)) % 2 != 0:
        # PyTorch's trunc-div padding only yields a 'same'-shaped output (and thus
        # a shape-compatible hh*hx add) when dilation*(kernel_size-1) is even.
        raise NotImplementedError(
            "IndRNNCell Pallas kernel requires dilation*(kernel_size-1) to be even.")
    p = (D * (K - 1)) // 2
    HW = H * W
    L = B * HW
    CKK = Cin * K * K

    if b_ih is None:
        b_ih = jnp.zeros((Ch,), hx.dtype)

    # ---- im2col of the (small, Cin-wide) input, folded to (CKK, B*HW). ----
    xp = jnp.pad(x, ((0, 0), (0, 0), (p, p), (p, p)))
    taps = [xp[:, :, ky * D:ky * D + H, kx * D:kx * D + W]
            for ky in range(K) for kx in range(K)]            # each (B, Cin, H, W)
    # CKK index after reshape = c*K*K + ky*K + kx, matching w_ih.reshape below.
    cols = (jnp.stack(taps, axis=2).reshape(B, CKK, HW)
            .transpose(1, 0, 2).reshape(CKK, L))

    w2 = w_ih.reshape(Ch, CKK)
    if matmul_dtype is not None:          # bf16 default: halves the dominant stream
        cols = cols.astype(matmul_dtype)
        w2 = w2.astype(matmul_dtype)

    # bias and hh merged into one (Ch, 2) operand (one fewer padded VMEM block).
    params = jnp.concatenate(
        [b_ih.reshape(Ch, 1), hh.reshape(Ch, 1)], axis=1).astype(jnp.float32)

    # hx folded to (Ch, B*HW) with the same column order as cols (tiny transpose).
    hx2 = hx.reshape(B, Ch, HW).transpose(1, 0, 2).reshape(Ch, L)

    T = _pick_tile(L, spatial_tile_cap)
    n_tiles = L // T

    flops = 2 * L * CKK * Ch + 3 * Ch * L
    # NOTE: omits the wrapper-side im2col materialization (XLA writes/reads cols
    # in HBM before the kernel) -- op-level profiles under-report total traffic.
    bytes_accessed = (cols.size * cols.dtype.itemsize
                      + w2.size * w2.dtype.itemsize
                      + hx2.size * hx2.dtype.itemsize
                      + params.size * 4
                      + Ch * L * hx.dtype.itemsize)

    out = pl.pallas_call(
        _indrnn_kernel,
        out_shape=jax.ShapeDtypeStruct((Ch, L), hx.dtype),
        grid=(n_tiles,),
        in_specs=[
            pl.BlockSpec((CKK, T), lambda s: (0, s)),   # im2col patches
            pl.BlockSpec((Ch, T), lambda s: (0, s)),    # hx
            pl.BlockSpec((Ch, CKK), lambda s: (0, 0)),  # conv weight
            pl.BlockSpec((Ch, 2), lambda s: (0, 0)),    # [bias | hh]
        ],
        out_specs=pl.BlockSpec((Ch, T), lambda s: (0, s)),
        compiler_params=pltpu.CompilerParams(
            dimension_semantics=("parallel",),
            vmem_limit_bytes=32 * 1024 * 1024,
        ),
        cost_estimate=pl.CostEstimate(
            flops=flops, transcendentals=0, bytes_accessed=bytes_accessed),
    )(cols, hx2, w2, params)

    # (Ch, B*HW) -> (B, Ch, H, W)
    return out.reshape(Ch, B, H, W).transpose(1, 0, 2, 3)


def _reference_forward(x, hx, w_ih, b_ih, hh, *, kernel_size, dilation=1):
    """Pure-JAX reference mirroring torch.nn.Conv2d + hh*hx + ReLU."""
    p = (dilation * (kernel_size - 1)) // 2
    conv = lax.conv_general_dilated(
        x, w_ih, window_strides=(1, 1), padding=[(p, p), (p, p)],
        rhs_dilation=(dilation, dilation),
        dimension_numbers=("NCHW", "OIHW", "NCHW"))
    conv = conv + b_ih[None, :, None, None]
    return jax.nn.relu(conv + hh * hx)


if __name__ == "__main__":
    # Module config: IndRNNCell(input_size=4, hidden_size=32, conv_dim=2, kernel_size=3)
    B, Cin, H, W = 2, 4, 16, 16
    hidden, K = 32, 3
    std = 1.0 / (hidden * (1 + K ** 2))

    key = jax.random.PRNGKey(0)
    kx_, kh_, kw_, kb_, khh_ = jax.random.split(key, 5)
    x = jax.random.normal(kx_, (B, Cin, H, W), jnp.float32)
    hx = jax.random.normal(kh_, (B, hidden, H, W), jnp.float32)
    w_ih = std * jax.random.normal(kw_, (hidden, Cin, K, K), jnp.float32)
    b_ih = 0.01 * jax.random.normal(kb_, (hidden,), jnp.float32)
    hh = std * jax.random.normal(khh_, (1, hidden, 1, 1), jnp.float32)

    for dil in (1, 2):
        ref = _reference_forward(x, hx, w_ih, b_ih, hh, kernel_size=K, dilation=dil)

        # Exact path (f32 matmul) -- tight tolerance.
        out_f32 = jax.block_until_ready(
            indrnn_cell_forward(x, hx, w_ih, b_ih, hh, kernel_size=K,
                                dilation=dil, matmul_dtype=None))
        np.testing.assert_allclose(np.asarray(out_f32), np.asarray(ref),
                                   atol=1e-5, rtol=1e-5)

        # Default bf16-operand path (f32 accumulate) -- relaxed tolerance.
        out_bf16 = jax.block_until_ready(
            indrnn_cell_forward(x, hx, w_ih, b_ih, hh, kernel_size=K, dilation=dil))
        np.testing.assert_allclose(np.asarray(out_bf16), np.asarray(ref),
                                   atol=2e-3, rtol=2e-2)

    print("KERNEL_OK")
</pallas_src>

<mosaic_0001>
module attributes {stable_mosaic.version = 11 : i64} {
  func.func @_indrnn_kernel(%arg0: i32, %arg1: memref<36x512xf32, #tpu.memory_space<vmem>>, %arg2: memref<32x512xf32, #tpu.memory_space<vmem>>, %arg3: memref<32x36xf32, #tpu.memory_space<vmem>>, %arg4: memref<32x2xf32, #tpu.memory_space<vmem>>, %arg5: memref<32x512xf32, #tpu.memory_space<vmem>>) attributes {dimension_semantics = [#tpu.dimension_semantics<parallel>], iteration_bounds = array<i64: 1>, scalar_prefetch = 0 : i64, scratch_operands = 0 : i64, tpu.core_type = #tpu.core_type<tc>, window_params = [{transform_indices = @transform_0, window_bounds = array<i64: 36, 512>}, {transform_indices = @transform_1, window_bounds = array<i64: 32, 512>}, {pipeline_mode = #tpu.pipeline_mode<synchronous>, transform_indices = @transform_2, window_bounds = array<i64: 32, 36>}, {pipeline_mode = #tpu.pipeline_mode<synchronous>, transform_indices = @transform_3, window_bounds = array<i64: 32, 2>}, {transform_indices = @transform_4, window_bounds = array<i64: 32, 512>}]} {
    %c0 = arith.constant 0 : index
    %c0_0 = arith.constant 0 : index
    %0 = vector.load %arg3[%c0, %c0_0] : memref<32x36xf32, #tpu.memory_space<vmem>>, vector<32x36xf32>
    %c0_1 = arith.constant 0 : index
    %c0_2 = arith.constant 0 : index
    %1 = vector.load %arg1[%c0_1, %c0_2] : memref<36x512xf32, #tpu.memory_space<vmem>>, vector<36x512xf32>
    %cst = arith.constant dense<0.000000e+00> : vector<32x512xf32>
    %2 = tpu.matmul %0, %1, %cst {dimension_numbers = #tpu.dot_dimension_numbers<[1], [0], [0], [1], [0, 0, 1, 1], [], []>} : vector<32x36xf32>, vector<36x512xf32>, vector<32x512xf32> -> vector<32x512xf32>
    %c0_3 = arith.constant 0 : index
    %c0_4 = arith.constant 0 : index
    %3 = vector.load %arg4[%c0_3, %c0_4] : memref<32x2xf32, #tpu.memory_space<vmem>>, vector<32x2xf32>
    %4 = vector.extract_strided_slice %3 {offsets = [0, 0], sizes = [32, 1], strides = [1, 1]} : vector<32x2xf32> to vector<32x1xf32>
    %5 = vector.extract_strided_slice %3 {offsets = [0, 1], sizes = [32, 1], strides = [1, 1]} : vector<32x2xf32> to vector<32x1xf32>
    %6 = vector.broadcast %4 : vector<32x1xf32> to vector<32x512xf32>
    %7 = arith.addf %2, %6 : vector<32x512xf32>
    %c0_5 = arith.constant 0 : index
    %c0_6 = arith.constant 0 : index
    %8 = vector.load %arg2[%c0_5, %c0_6] : memref<32x512xf32, #tpu.memory_space<vmem>>, vector<32x512xf32>
    %9 = vector.broadcast %5 : vector<32x1xf32> to vector<32x512xf32>
    %10 = arith.mulf %9, %8 : vector<32x512xf32>
    %11 = arith.addf %7, %10 : vector<32x512xf32>
    %cst_7 = arith.constant 0.000000e+00 : f32
    %12 = vector.broadcast %cst_7 : f32 to vector<32x512xf32>
    %13 = arith.maximumf %11, %12 : vector<32x512xf32>
    %c0_8 = arith.constant 0 : index
    %c0_9 = arith.constant 0 : index
    %14 = vector.load %arg5[%c0_8, %c0_9] : memref<32x512xf32, #tpu.memory_space<vmem>>, vector<32x512xf32>
    tpu.vector_store %arg5[%c0_8, %c0_9], %13 {strides = array<i32>} : memref<32x512xf32, #tpu.memory_space<vmem>>, vector<32x512xf32>,
    return
  }
  func.func @transform_0(%arg0: i32) -> (i32, i32) {
    %c0_i32 = arith.constant 0 : i32
    %c0_i32_0 = arith.constant 0 : i32
    return %c0_i32, %arg0 : i32, i32
  }
  func.func @transform_1(%arg0: i32) -> (i32, i32) {
    %c0_i32 = arith.constant 0 : i32
    %c0_i32_0 = arith.constant 0 : i32
    return %c0_i32, %arg0 : i32, i32
  }
  func.func @transform_2(%arg0: i32) -> (i32, i32) {
    %c0_i32 = arith.constant 0 : i32
    %c0_i32_0 = arith.constant 0 : i32
    %c0_i32_1 = arith.constant 0 : i32
    return %c0_i32, %c0_i32_0 : i32, i32
  }
  func.func @transform_3(%arg0: i32) -> (i32, i32) {
    %c0_i32 = arith.constant 0 : i32
    %c0_i32_0 = arith.constant 0 : i32
    %c0_i32_1 = arith.constant 0 : i32
    return %c0_i32, %c0_i32_0 : i32, i32
  }
  func.func @transform_4(%arg0: i32) -> (i32, i32) {
    %c0_i32 = arith.constant 0 : i32
    %c0_i32_0 = arith.constant 0 : i32
    return %c0_i32, %arg0 : i32, i32
  }
}

</mosaic_0001>

<bundles_post_ra>
// kernel: tpu_custom_call.1
= control target key start
LH: loop header
LB: loop body
LE: loop exit
PB: predicated region body
PF: predicated region fallthrough
CT: control target
= control target key end

     0   :  { %9 = vsyncpa [#allocation3], 0  ;;  %s658_s0 = inlined_call_operand.hbm [shape: f32[36,512], index: 0, kind: input, shape index: {}]   ;;  %s659_s1 = inlined_call_operand.hbm [shape: f32[32,512], index: 1, kind: input, shape index: {}]   ;;  %s660_s2 = inlined_call_operand.vmem [shape: f32[32,36], index: 2, kind: input, shape index: {}]   ;;  %s661_s3 = inlined_call_operand.vmem [shape: f32[32,2], index: 3, kind: input, shape index: {}]   ;;  %s662_s4 = inlined_call_operand.hbm [shape: f32[32,512], index: 4, kind: output, shape index: {}]  }
   0x1   :  { %10 = vsyncpa [#allocation6], 0 }
   0x2   :  { %11 = vsyncpa [#allocation4], 0  ;;  %s524_s15 = smov [#allocation2]   ;;  %s452_s19 = scalar_lea.hbm %s658_s0, 2560 }
   0x3   :  { %s17_s16 = sshll.u32 %s524_s15, 4  ;;  %p453_p0 = scmp.ne.s32.totalorder %s658_s0, %s452_s19  ;;  %s18_s16 = int_to_ptr.vmem [resolvable:$true] %s17_s16 }
   0x4   :  { %p456_p1 = scmp.lt.u32.totalorder %s452_s19, %s658_s0 }
   0x6   :  { %p458_p2 = pnand %p456_p1, %p453_p0 }
   0x8   :  { %461 = shalt.err (!%p458_p2)
}
   0x9   :  { %s462_s24 = scalar_lea.vmem %s18_s16, 2560  ;;  %p467_p4 = scmp.lt.s32.totalorder %s18_s16, %s18_s16 }
   0xa   :  { %p463_p3 = scmp.ne.s32.totalorder %s18_s16, %s462_s24  ;;  %p468_p5 = scmp.lt.s32.totalorder %s462_s24, %s462_s24 }
   0xc   :  { %p469_p6 = por %p468_p5, %p467_p4 }
   0xe   :  { %p470_p7 = pnand %p469_p6, %p463_p3 }
  0x10   :  { %473 = shalt.err (!%p470_p7)
}
  0x11   :  { %s525_s25 = smov 512   ;;  %s526_s26 = smov 32  }
  0x12   :  { %23 = dma.hbm_to_vmem [thread:$0]  %s658_s0, 2560, %s18_s16, [#allocation3], %s525_s25, %s525_s25, %s526_s26  }
  0x13   :  { %s527_s29 = smov [#allocation5]   ;;  %s474_s7 = scalar_lea.hbm %s659_s1, 2048 }
  0x14   :  { %s29_s30 = sshll.u32 %s527_s29, 4  ;;  %p475_p8 = scmp.ne.s32.totalorder %s659_s1, %s474_s7  ;;  %s30_s30 = int_to_ptr.vmem [resolvable:$true] %s29_s30 }
  0x15   :  { %p478_p9 = scmp.lt.u32.totalorder %s474_s7, %s659_s1 }
  0x17   :  { %p480_p10 = pnand %p478_p9, %p475_p8 }
  0x19   :  { %483 = shalt.err (!%p480_p10)
}
  0x1a   :  { %s484_s12 = scalar_lea.vmem %s30_s30, 2048  ;;  %p489_p12 = scmp.lt.s32.totalorder %s30_s30, %s30_s30 }
  0x1b   :  { %p485_p11 = scmp.ne.s32.totalorder %s30_s30, %s484_s12  ;;  %p490_p13 = scmp.lt.s32.totalorder %s484_s12, %s484_s12 }
  0x1d   :  { %p491_p0 = por %p490_p13, %p489_p12 }
  0x1f   :  { %p492_p1 = pnand %p491_p0, %p485_p11 }
  0x21   :  { %495 = shalt.err (!%p492_p1)
}
  0x22   :  { %35 = dma.hbm_to_vmem [thread:$0]  %s659_s1, 2048, %s30_s30, [#allocation6], %s525_s25, %s525_s25, %s526_s26  }
  0x23   :  { %518 = dma.done.wait [#allocation3], 2560  }
  0x24   :  { %519 = vsyncadd [#allocation3], 4294964736 }
  0x25   :  { %520 = dma.done.wait [#allocation6], 2048  }
  0x26   :  { %521 = vsyncadd [#allocation6], 4294965248  ;;  %v528_v0 = vmov 0.0   ;;  %v529_v1 = vmov 0   ;;  %v51_v2 = vld [vmem:[#allocation2 + $0x8] sm:$0xff]  ;;  %v53_v4 = vld [vmem:[#allocation2 + $0x18] sm:$0xff] }
  0x27   :  { %184 = vmatprep.mubr.f32.mxu0 %v528_v0  ;;  %273 = vmatprep.mubr.f32.mxu1 %v528_v0  ;;  %v55_v3 = vld [vmem:[#allocation2 + $0x28] sm:$0xff]  ;;  %v57_v6 = vld [vmem:[#allocation2 + $0x38] sm:$0xff]  ;;  %v50_v7 = vld [vmem:[#allocation2] sm:$0xff]  ;;  %vm107_vm0 = vcmask 1043456   ;;  %vm94_vm1 = vcmask 293888   ;;  %v530_v37 = vmov 1  }
  0x28   :  { %448 = vset.pattern.permute.xlu0 %v529_v1  ;;  %449 = vset.pattern.permute.xlu1 %v529_v1  ;;  %v424_v5 = vpack.c.bf16 %v55_v3, %v51_v2  ;;  %v54_v8 = vld [vmem:[#allocation2 + $0x20] sm:$0xff]  ;;  %v432_v9 = vpack.c.bf16 %v57_v6, %v53_v4  ;;  %v52_v11 = vld [vmem:[#allocation2 + $0x10] sm:$0xff]  ;;  %v59_v13 = vld [vmem:[#allocation2 + $0x48] sm:$0xff] }
  0x29   :  { %v426_v10 = vpack.c.bf16 %v54_v8, %v50_v7  ;;  %v56_v12 = vld [vmem:[#allocation2 + $0x30] sm:$0xff]  ;;  %v63_v15 = vld [vmem:[#allocation2 + $0x68] sm:$0xff]  ;;  %v61_v16 = vld [vmem:[#allocation2 + $0x58] sm:$0xff] }
  0x2a   :  { %425 = vmatprep.subr.bf16.mxu0 %v424_v5  ;;  %v434_v14 = vpack.c.bf16 %v56_v12, %v52_v11  ;;  %v65_v17 = vld [vmem:[#allocation2 + $0x78] sm:$0xff]  ;;  %433 = vmatprep.subr.bf16.mxu1 %v432_v9  ;;  %v428_v18 = vpack.c.bf16 %v63_v15, %v59_v13  ;;  %v58_v20 = vld [vmem:[#allocation2 + $0x40] sm:$0xff]  ;;  %v60_v22 = vld [vmem:[#allocation2 + $0x50] sm:$0xff] }
  0x2b   :  { %427 = vmatpush1.bf16.msra.mxu0 %v426_v10  ;;  %v436_v19 = vpack.c.bf16 %v65_v17, %v61_v16  ;;  %v62_v21 = vld [vmem:[#allocation2 + $0x60] sm:$0xff]  ;;  %v64_v24 = vld [vmem:[#allocation2 + $0x70] sm:$0xff]  ;;  %v67_v26 = vld [vmem:[#allocation2 + $0x88] sm:$0xf] }
  0x2c   :  { %435 = vmatpush1.bf16.msra.mxu1 %v434_v14  ;;  %v430_v23 = vpack.c.bf16 %v62_v21, %v58_v20  ;;  %429 = vmatprep.subr.bf16.mxu0 %v428_v18  ;;  %v438_v25 = vpack.c.bf16 %v64_v24, %v60_v22  ;;  %v69_v27 = vld [vmem:[#allocation2 + $0x98] sm:$0xf]  ;;  %v70_v28 = vld [vmem:[%s661_s3] sm:$0xff]  ;;  %v72_v29 = vld [vmem:[%s661_s3 + $0x10] sm:$0xff] }
  0x2d   :  { %437 = vmatprep.subr.bf16.mxu1 %v436_v19  ;;  %v66_v30 = vld [vmem:[#allocation2 + $0x80] sm:$0xf]  ;;  %v68_v31 = vld [vmem:[#allocation2 + $0x90] sm:$0xf]  ;;  %76 = vperm.xlu0 %448, %v70_v28   ;;  %v71_v33 = vld [vmem:[%s661_s3 + $0x8] sm:$0xff] }
  0x2e   :  { %v46_v32 = vld [vmem:[%s660_s2] sm:$0xff]  ;;  %86 = vperm.xlu1 %449, %v72_v29   ;;  %v73_v34 = vld [vmem:[%s661_s3 + $0x18] sm:$0xff]  ;;  %v47_v35 = vld [vmem:[%s660_s2 + $0x8] sm:$0xff] }
  0x2f   :  { %431 = vmatpush1.bf16.msra.mxu0 %v430_v23  ;;  %v48_v36 = vld [vmem:[%s660_s2 + $0x10] sm:$0xff]  ;;  %v49_v38 = vld [vmem:[%s660_s2 + $0x18] sm:$0xff]  ;;  %v298_v44 = vld [vmem:[#allocation5] sm:$0xff]  ;;  %s531_s2 = smov [#allocation7]  }
  0x30   :  { %439 = vmatpush1.bf16.msra.mxu1 %v438_v25  ;;  %412 = vmatprep.subr.msk.mxu0 %vm107_vm0, %v67_v26  ;;  %v300_v45 = vld [vmem:[#allocation5 + $0x10] sm:$0xff]  ;;  %v299_v46 = vld [vmem:[#allocation5 + $0x8] sm:$0xff]  ;;  %v301_v47 = vld [vmem:[#allocation5 + $0x18] sm:$0xff]  ;;  %s399_s30 = sshll.u32 %s531_s2, 4  ;;  %s400_s30 = int_to_ptr.vmem [resolvable:$true] %s399_s30 }
  0x31   :  { %418 = vmatprep.subr.msk.mxu1 %vm107_vm0, %v69_v27  ;;  %81 = vperm.xlu0 %448, %v71_v33   ;;  %v302_v53 = vld [vmem:[#allocation5 + $0x20] sm:$0xff]  ;;  %v304_v58 = vld [vmem:[#allocation5 + $0x30] sm:$0xff]  ;;  %v303_v59 = vld [vmem:[#allocation5 + $0x28] sm:$0xff]  ;;  %s496_s5 = scalar_lea.vmem %s400_s30, 2048  ;;  %p501_p3 = scmp.lt.s32.totalorder %s400_s30, %s400_s30 }
  0x32   :  { %91 = vperm.xlu1 %449, %v73_v34   ;;  %v305_v63 = vld [vmem:[#allocation5 + $0x38] sm:$0xff]  ;;  %v306_v8 = vld [vmem:[#allocation5 + $0x40] sm:$0xff]  ;;  %v307_v16 = vld [vmem:[#allocation5 + $0x48] sm:$0xff]  ;;  %p497_p2 = scmp.ne.s32.totalorder %s400_s30, %s496_s5  ;;  %p502_p4 = scmp.lt.s32.totalorder %s496_s5, %s496_s5 }
  0x33   :  { %413 = vmatpush1.msk.msra.mxu0 %vm107_vm0, %v66_v30  ;;  %v308_v17 = vld [vmem:[#allocation5 + $0x50] sm:$0xff]  ;;  %v309_v23 = vld [vmem:[#allocation5 + $0x58] sm:$0xff] }
  0x34   :  { %419 = vmatpush1.msk.msra.mxu1 %vm107_vm0, %v68_v31  ;;  %414 = vmatmul.mubr.msk.f32.vlgmr.msra.gmra.mrb[0].mxu0 %vm94_vm1, %v46_v32  ;;  %p503_p5 = por %p502_p4, %p501_p3 }
  0x35   :  { %420 = vmatmul.mubr.msk.f32.vlgmr.msra.gmra.mrb[0].mxu1 %vm94_vm1, %v46_v32  ;;  %190 = vmatprep.mubr.f32.mxu0 %v528_v0 }
  0x36   :  { %279 = vmatprep.mubr.f32.mxu1 %v528_v0  ;;  %450 = vset.pattern.permute.xlu0 %v530_v37  ;;  %p504_p6 = pnand %p503_p5, %p497_p2 }
  0x37   :  { %315 = vperm.xlu0 %450, %v70_v28   ;;  %451 = vset.pattern.permute.xlu1 %v530_v37 }
  0x38   :  { %415 = vmatmul.mubr.msk.f32.gmra.mrb[2].mxu0 %vm94_vm1, %v47_v35  ;;  %319 = vperm.xlu1 %451, %v71_v33  }
  0x39   :  { %421 = vmatmul.mubr.msk.f32.gmra.mrb[2].mxu1 %vm94_vm1, %v47_v35  ;;  %196 = vmatprep.mubr.f32.mxu0 %v528_v0 }
  0x3a   :  { %285 = vmatprep.mubr.f32.mxu1 %v528_v0 }
  0x3b   :  { %327 = vperm.xlu0 %450, %v73_v34  }
  0x3c   :  { %416 = vmatmul.mubr.msk.f32.gmra.mrb[4].mxu0 %vm94_vm1, %v48_v36  ;;  %323 = vperm.xlu1 %451, %v72_v29  }
  0x3d   :  { %422 = vmatmul.mubr.msk.f32.gmra.mrb[4].mxu1 %vm94_vm1, %v48_v36  ;;  %202 = vmatprep.mubr.f32.mxu0 %v528_v0 }
  0x3e   :  { %291 = vmatprep.mubr.f32.mxu1 %v528_v0 }
  0x40   :  { %417 = vmatmul.mubr.msk.f32.gmra.mrb[6].mxu0 %vm94_vm1, %v49_v38 }
  0x41   :  { %423 = vmatmul.mubr.msk.f32.gmra.mrb[6].mxu1 %vm94_vm1, %v49_v38 }
  0xac   :  { %v77_v39 = vpop.permute.xlu0 %76 }
  0xad   :  { %v631_v40 = vpop.permute.xlu1 %86 }
  0xb0   :  { %v82_v41 = vpop.permute.xlu0 %81 }
  0xb1   :  { %v633_v42 = vpop.permute.xlu1 %91 }
  0xb6   :  { %v316_v43 = vpop.permute.xlu0 %315 }
  0xb7   :  { %v320_v48 = vpop.permute.xlu1 %319  ;;  %v330_v49 = vmul.f32 %v316_v43, %v298_v44  ;;  %v332_v51 = vmul.f32 %v316_v43, %v300_v45  ;;  %v331_v52 = vmul.f32 %v316_v43, %v299_v46  ;;  %v333_v57 = vmul.f32 %v316_v43, %v301_v47  ;;  %v311_v43 = vld [vmem:[#allocation5 + $0x68] sm:$0xff]  ;;  %v312_v47 = vld [vmem:[#allocation5 + $0x70] sm:$0xff] }
  0xb8   :  { %v334_v2 = vmul.f32 %v320_v48, %v302_v53  ;;  %v336_v6 = vmul.f32 %v320_v48, %v304_v58  ;;  %v335_v7 = vmul.f32 %v320_v48, %v303_v59  ;;  %v337_v15 = vmul.f32 %v320_v48, %v305_v63 }
  0xba   :  { %v328_v33 = vpop.permute.xlu0 %327 }
  0xbb   :  { %v324_v9 = vpop.permute.xlu1 %323 }
  0xbc   :  { %v338_v27 = vmul.f32 %v324_v9, %v306_v8  ;;  %v339_v30 = vmul.f32 %v324_v9, %v307_v16  ;;  %v340_v31 = vmul.f32 %v324_v9, %v308_v17  ;;  %v341_v36 = vmul.f32 %v324_v9, %v309_v23 }
 0x107   :  { %v186_v50 = vpop.f32.mrb[0].mxu0 }
 0x108   :  { %v187_v54 = vadd.f32 %v186_v50, %v77_v39  ;;  %v275_v55 = vpop.f32.mrb[0].mxu1  ;;  %v188_v56 = vpop.f32.mrb[1].mxu0 }
 0x109   :  { %v276_v60 = vadd.f32 %v275_v55, %v77_v39  ;;  %v189_v61 = vadd.f32 %v188_v56, %v77_v39  ;;  %v277_v62 = vpop.f32.mrb[1].mxu1  ;;  %v343_v56 = vmul.f32 %v328_v33, %v311_v43 }
 0x10a   :  { %v346_v0 = vadd.f32 %v330_v49, %v187_v54  ;;  %v278_v1 = vadd.f32 %v277_v62, %v77_v39  ;;  %v310_v39 = vld [vmem:[#allocation5 + $0x60] sm:$0xff]  ;;  %v313_v54 = vld [vmem:[#allocation5 + $0x78] sm:$0xff] }
 0x10b   :  { %v348_v3 = vadd.f32 %v332_v51, %v276_v60  ;;  %v347_v4 = vadd.f32 %v331_v52, %v189_v61  ;;  %v192_v5 = vpop.f32.mrb[2].mxu0  ;;  %v342_v55 = vmul.f32 %v328_v33, %v310_v39  ;;  %v344_v60 = vmul.f32 %v328_v33, %v312_v47 }
 0x10c   :  { %v362_v10 = vmax.f32 %v346_v0, 0.0  ;;  %v349_v11 = vadd.f32 %v333_v57, %v278_v1  ;;  %v193_v12 = vadd.f32 %v192_v5, %v82_v41  ;;  %v281_v13 = vpop.f32.mrb[2].mxu1  ;;  %v194_v14 = vpop.f32.mrb[3].mxu0  ;;  %v345_v5 = vmul.f32 %v328_v33, %v313_v54 }
 0x10d   :  { %v364_v18 = vmax.f32 %v348_v3, 0.0  ;;  %v363_v19 = vmax.f32 %v347_v4, 0.0  ;;  %v282_v20 = vadd.f32 %v281_v13, %v82_v41  ;;  %v195_v21 = vadd.f32 %v194_v14, %v82_v41  ;;  %v283_v22 = vpop.f32.mrb[3].mxu1 }
 0x10e   :  { %378 = vst [vmem:[#allocation7] sm:$0xff] %v362_v10  ;;  %v365_v24 = vmax.f32 %v349_v11, 0.0  ;;  %v350_v25 = vadd.f32 %v334_v2, %v193_v12  ;;  %v284_v26 = vadd.f32 %v283_v22, %v82_v41 }
 0x10f   :  { %380 = vst [vmem:[#allocation7 + $0x10] sm:$0xff] %v364_v18  ;;  %379 = vst [vmem:[#allocation7 + $0x8] sm:$0xff] %v363_v19  ;;  %v352_v28 = vadd.f32 %v336_v6, %v282_v20  ;;  %v351_v29 = vadd.f32 %v335_v7, %v195_v21  ;;  %v198_v32 = vpop.f32.mrb[4].mxu0 }
 0x110   :  { %381 = vst [vmem:[#allocation7 + $0x18] sm:$0xff] %v365_v24  ;;  %v366_v34 = vmax.f32 %v350_v25, 0.0  ;;  %v353_v35 = vadd.f32 %v337_v15, %v284_v26  ;;  %v199_v37 = vadd.f32 %v198_v32, %v631_v40  ;;  %v287_v38 = vpop.f32.mrb[4].mxu1  ;;  %v200_v44 = vpop.f32.mrb[5].mxu0 }
 0x111   :  { %v368_v41 = vmax.f32 %v352_v28, 0.0  ;;  %v367_v45 = vmax.f32 %v351_v29, 0.0  ;;  %v288_v46 = vadd.f32 %v287_v38, %v631_v40  ;;  %v201_v48 = vadd.f32 %v200_v44, %v631_v40  ;;  %v289_v49 = vpop.f32.mrb[5].mxu1 }
 0x112   :  { %382 = vst [vmem:[#allocation7 + $0x20] sm:$0xff] %v366_v34  ;;  %v369_v50 = vmax.f32 %v353_v35, 0.0  ;;  %v354_v51 = vadd.f32 %v338_v27, %v199_v37  ;;  %v290_v52 = vadd.f32 %v289_v49, %v631_v40 }
 0x113   :  { %384 = vst [vmem:[#allocation7 + $0x30] sm:$0xff] %v368_v41  ;;  %383 = vst [vmem:[#allocation7 + $0x28] sm:$0xff] %v367_v45  ;;  %v356_v53 = vadd.f32 %v340_v31, %v288_v46  ;;  %v355_v57 = vadd.f32 %v339_v30, %v201_v48  ;;  %v204_v58 = vpop.f32.mrb[6].mxu0 }
 0x114   :  { %385 = vst [vmem:[#allocation7 + $0x38] sm:$0xff] %v369_v50  ;;  %v370_v59 = vmax.f32 %v354_v51, 0.0  ;;  %v357_v61 = vadd.f32 %v341_v36, %v290_v52  ;;  %v205_v62 = vadd.f32 %v204_v58, %v633_v42  ;;  %v293_v63 = vpop.f32.mrb[6].mxu1  ;;  %v206_v0 = vpop.f32.mrb[7].mxu0 }
 0x115   :  { %v372_v1 = vmax.f32 %v356_v53, 0.0  ;;  %v371_v2 = vmax.f32 %v355_v57, 0.0  ;;  %v294_v40 = vadd.f32 %v293_v63, %v633_v42  ;;  %v207_v3 = vadd.f32 %v206_v0, %v633_v42  ;;  %v295_v4 = vpop.f32.mrb[7].mxu1 }
 0x116   :  { %386 = vst [vmem:[#allocation7 + $0x40] sm:$0xff] %v370_v59  ;;  %v373_v6 = vmax.f32 %v357_v61, 0.0  ;;  %v358_v7 = vadd.f32 %v342_v55, %v205_v62  ;;  %v296_v8 = vadd.f32 %v295_v4, %v633_v42 }
 0x117   :  { %388 = vst [vmem:[#allocation7 + $0x50] sm:$0xff] %v372_v1  ;;  %387 = vst [vmem:[#allocation7 + $0x48] sm:$0xff] %v371_v2  ;;  %v360_v9 = vadd.f32 %v344_v60, %v294_v40  ;;  %v359_v10 = vadd.f32 %v343_v56, %v207_v3 }
 0x118   :  { %389 = vst [vmem:[#allocation7 + $0x58] sm:$0xff] %v373_v6  ;;  %v374_v11 = vmax.f32 %v358_v7, 0.0  ;;  %v361_v12 = vadd.f32 %v345_v5, %v296_v8 }
 0x119   :  { %v376_v13 = vmax.f32 %v360_v9, 0.0  ;;  %v375_v14 = vmax.f32 %v359_v10, 0.0 }
 0x11a   :  { %390 = vst [vmem:[#allocation7 + $0x60] sm:$0xff] %v374_v11  ;;  %v377_v15 = vmax.f32 %v361_v12, 0.0 }
 0x11b   :  { %392 = vst [vmem:[#allocation7 + $0x70] sm:$0xff] %v376_v13  ;;  %391 = vst [vmem:[#allocation7 + $0x68] sm:$0xff] %v375_v14 }
 0x11c   :  { %393 = vst [vmem:[#allocation7 + $0x78] sm:$0xff] %v377_v15 }
 0x11d   :  { %507 = shalt.err (!%p504_p6)
}
 0x11e   :  { %s508_s8 = scalar_lea.hbm %s662_s4, 2048 }
 0x11f   :  { %p509_p7 = scmp.ne.s32.totalorder %s662_s4, %s508_s8  ;;  %p512_p8 = scmp.lt.u32.totalorder %s508_s8, %s662_s4 }
 0x121   :  { %p514_p9 = pnand %p512_p8, %p509_p7 }
 0x123   :  { %517 = shalt.err (!%p514_p9)
}
 0x124   :  { %405 = dma.vmem_to_hbm [thread:$0]  %s400_s30, 2048, %s662_s4, [#allocation4], %s525_s25, %s525_s25, %s526_s26  }
 0x125   :  { %522 = dma.done.wait [#allocation4], 2048  }
 0x126   :  { %523 = vsyncadd [#allocation4], 4294965248 }
 0x127   :  { %409 = vsyncpa [#allocation3], 1 }
 0x128   :  { %410 = vsyncpa [#allocation6], 1 }
 0x129   :  { %411 = vsyncpa [#allocation4], 1 }

</bundles_post_ra>
